<compile_context>
chip_gen: v7x
topology: tpu7x:2x2x1
jax: 0.10.0
libtpu: 0.0.40
codegen_flags: <defaults>
</compile_context>

<pallas_src>
import jax
import jax.numpy as jnp
from jax import lax
from jax.experimental import pallas as pl
from jax.experimental.pallas import tpu as pltpu

HIDDEN = 64
LANES = 128
LN_EPS = 1e-5
NEG_BIG = -1e30          # padded-logit bias; stays in f32, never cast to bf16
_INV_HIDDEN = 1.0 / HIDDEN

# Row indices inside the stacked (8,128) bias/gamma/beta block.
_B1, _G1, _BE1, _B2, _G2, _BE2, _B3 = range(7)


def _round_up(n, m):
    return ((n + m - 1) // m) * m


def _layernorm_padded(h, gamma, beta):
    # Padded lanes of h are exactly zero (zero-padded weights & biases), so full-lane
    # sums equal sums over the real 64 columns; divide by the true HIDDEN.
    # gamma/beta are zero in the padded lanes, so the LN output stays exactly zero there.
    s1 = jnp.sum(h, axis=-1, keepdims=True)
    s2 = jnp.sum(h * h, axis=-1, keepdims=True)
    mean = s1 * _INV_HIDDEN
    var = s2 * _INV_HIDDEN - mean * mean   # f32; fine for post-linear activations
    return (h - mean) * lax.rsqrt(var + LN_EPS) * gamma + beta


def policy_kernel(x_ref, w1_ref, w2_ref, w3_ref, vec_ref, out_ref):
    x = x_ref[...]                       # (TB, state_dim) f32
    vec = vec_ref[...]                   # (8, 128) f32 stacked bias/gamma/beta rows
    b1, g1, be1 = vec[_B1:_B1 + 1], vec[_G1:_G1 + 1], vec[_BE1:_BE1 + 1]
    b2, g2, be2 = vec[_B2:_B2 + 1], vec[_G2:_G2 + 1], vec[_BE2:_BE2 + 1]
    b3 = vec[_B3:_B3 + 1]                # real bias in [:action_dim], -1e30 in padded lanes

    # fc1 -> ln1 -> relu   (dropout is identity in eval mode)
    h = jnp.dot(x.astype(jnp.bfloat16), w1_ref[...],
                preferred_element_type=jnp.float32) + b1
    h = jnp.maximum(_layernorm_padded(h, g1, be1), 0.0)

    # fc2 -> ln2 -> relu
    h = jnp.dot(h.astype(jnp.bfloat16), w2_ref[...],
                preferred_element_type=jnp.float32) + b2
    h = jnp.maximum(_layernorm_padded(h, g2, be2), 0.0)

    # fc3 -> softmax over last dim. Padded logit lanes carry a -1e30 bias -> exp == 0,
    # so softmax over the 128-lane slab equals softmax over the real action lanes.
    logits = jnp.dot(h.astype(jnp.bfloat16), w3_ref[...],
                     preferred_element_type=jnp.float32) + b3
    m = jnp.max(logits, axis=-1, keepdims=True)
    e = jnp.exp(logits - m)
    probs = e / jnp.sum(e, axis=-1, keepdims=True)    # exact reciprocal -> sums to 1
    out_ref[...] = probs[:, :out_ref.shape[-1]]       # narrow (TB, action_dim) store


def prepare_params(params):
    """Pad raw (transposed, nn.Linear/LayerNorm-shaped) f32 params to the kernel layout.

    Weights go to bf16 (MXU operands); the stacked bias/gamma/beta block stays f32."""
    action_dim = params["w3"].shape[1]
    assert action_dim <= LANES, "policy head assumes <= 128 actions"

    w1 = jnp.pad(params["w1"], ((0, 0), (0, LANES - HIDDEN)))                      # (S,128)
    w2 = jnp.pad(params["w2"], ((0, LANES - HIDDEN), (0, LANES - HIDDEN)))         # (128,128)
    w3 = jnp.pad(params["w3"], ((0, LANES - HIDDEN), (0, LANES - action_dim)))     # (128,128)

    def row(a, fill=0.0):
        a = a.reshape(1, -1)
        return jnp.pad(a, ((0, 0), (0, LANES - a.shape[1])), constant_values=fill)

    vec = jnp.concatenate(
        [row(params["b1"]), row(params["g1"]), row(params["be1"]),
         row(params["b2"]), row(params["g2"]), row(params["be2"]),
         row(params["b3"], fill=NEG_BIG),
         jnp.zeros((1, LANES), jnp.float32)],       # spare row -> full (8,128) tile
        axis=0)

    padded = {
        "w1": w1.astype(jnp.bfloat16),
        "w2": w2.astype(jnp.bfloat16),
        "w3": w3.astype(jnp.bfloat16),
        "vec": vec.astype(jnp.float32),
    }
    return padded, action_dim


def policy_forward(x, padded_params, action_dim, *, tb=1024):
    """x: (B, state_dim) f32 -> (B, action_dim) f32 action probabilities."""
    B, state_dim = x.shape
    p = padded_params

    # Batch tiling: large row blocks (per-grid-step overhead ~0.35us), minimal padding,
    # and at least two grid steps whenever B > 8 so the "parallel" grid axis can shard
    # the batch across both v7x TensorCores (harmless on single-TC v5e/v6e).
    steps = max(pl.cdiv(B, tb), 2) if B > 8 else 1
    TB = min(_round_up(pl.cdiv(B, steps), 8), tb)
    Bp = _round_up(B, TB)
    if Bp != B:
        x = jnp.pad(x, ((0, Bp - B), (0, 0)))   # padded rows yield probs that are discarded

    def const_spec(a):
        nd = a.ndim
        return pl.BlockSpec(a.shape, lambda i, nd=nd: (0,) * nd)

    out = pl.pallas_call(
        policy_kernel,
        out_shape=jax.ShapeDtypeStruct((Bp, action_dim), jnp.float32),
        grid=(Bp // TB,),
        in_specs=[pl.BlockSpec((TB, state_dim), lambda i: (i, 0)),
                  const_spec(p["w1"]), const_spec(p["w2"]),
                  const_spec(p["w3"]), const_spec(p["vec"])],
        out_specs=pl.BlockSpec((TB, action_dim), lambda i: (i, 0)),
        compiler_params=pltpu.CompilerParams(
            dimension_semantics=("parallel",)),   # megacore batch sharding on v7x
    )(x, p["w1"], p["w2"], p["w3"], p["vec"])

    return out if Bp == B else out[:B]


def init_params(state_dim, action_dim, key):
    """Deterministic synthetic parameters matching nn.Linear / nn.LayerNorm shapes.

    PyTorch fc weights are (out, in); we store them transposed as (in, out)."""
    ks = jax.random.split(key, 3)

    def linear(k, fan_in, fan_out):
        kw, kb = jax.random.split(k)
        bound = 1.0 / jnp.sqrt(fan_in)
        w = jax.random.uniform(kw, (fan_in, fan_out), jnp.float32, -bound, bound)
        b = jax.random.uniform(kb, (1, fan_out), jnp.float32, -bound, bound)
        return w, b

    w1, b1 = linear(ks[0], state_dim, HIDDEN)
    w2, b2 = linear(ks[1], HIDDEN, HIDDEN)
    w3, b3 = linear(ks[2], HIDDEN, action_dim)
    return {
        "w1": w1, "b1": b1,
        "g1": jnp.ones((1, HIDDEN), jnp.float32), "be1": jnp.zeros((1, HIDDEN), jnp.float32),
        "w2": w2, "b2": b2,
        "g2": jnp.ones((1, HIDDEN), jnp.float32), "be2": jnp.zeros((1, HIDDEN), jnp.float32),
        "w3": w3, "b3": b3,
    }


def reference_forward(x, p):
    """Pure-f32 reference with the PyTorch module's semantics (eval mode)."""
    def ln(h, g, b):
        mu = jnp.mean(h, -1, keepdims=True)
        var = jnp.mean((h - mu) ** 2, -1, keepdims=True)
        return (h - mu) / jnp.sqrt(var + LN_EPS) * g + b
    h = jnp.maximum(ln(x @ p["w1"] + p["b1"], p["g1"], p["be1"]), 0.0)
    h = jnp.maximum(ln(h @ p["w2"] + p["b2"], p["g2"], p["be2"]), 0.0)
    return jax.nn.softmax(h @ p["w3"] + p["b3"], axis=-1)


if __name__ == "__main__":
    # TODO(synk): Dropout(0.1) is only active in training mode; eval-mode forward (identity) is implemented.
    B, state_dim, action_dim = 10, 16, 6   # non-multiple-of-8 batch, odd action count -> exercises padding
    key = jax.random.PRNGKey(0)
    kx, kp = jax.random.split(key)

    x = jax.random.normal(kx, (B, state_dim), jnp.float32)
    params = init_params(state_dim, action_dim, kp)
    padded_params, adim = prepare_params(params)

    probs = policy_forward(x, padded_params, adim)
    probs = jax.block_until_ready(probs)

    ref = reference_forward(x, params)
    assert probs.shape == (B, action_dim)
    assert bool(jnp.all(jnp.isfinite(probs)))
    # Exact softmax normalization (no approximate reciprocal).
    assert jnp.allclose(jnp.sum(probs, axis=-1), 1.0, atol=1e-5)
    # bf16 MXU operands with f32 accumulation vs. a pure-f32 reference.
    assert jnp.allclose(probs, ref, atol=1e-2, rtol=1e-2)
    print("KERNEL_OK")
</pallas_src>

<mosaic_0001>
module attributes {stable_mosaic.version = 11 : i64} {
  func.func @policy_kernel(%arg0: i32, %arg1: memref<8x16xf32, #tpu.memory_space<vmem>>, %arg2: memref<16x128xbf16, #tpu.memory_space<vmem>>, %arg3: memref<128x128xbf16, #tpu.memory_space<vmem>>, %arg4: memref<128x128xbf16, #tpu.memory_space<vmem>>, %arg5: memref<8x128xf32, #tpu.memory_space<vmem>>, %arg6: memref<8x6xf32, #tpu.memory_space<vmem>>) attributes {dimension_semantics = [#tpu.dimension_semantics<parallel>], iteration_bounds = array<i64: 2>, scalar_prefetch = 0 : i64, scratch_operands = 0 : i64, tpu.core_type = #tpu.core_type<tc>, window_params = [{transform_indices = @transform_0, window_bounds = array<i64: 8, 16>}, {pipeline_mode = #tpu.pipeline_mode<synchronous>, transform_indices = @transform_1, window_bounds = array<i64: 16, 128>}, {pipeline_mode = #tpu.pipeline_mode<synchronous>, transform_indices = @transform_2, window_bounds = array<i64: 128, 128>}, {pipeline_mode = #tpu.pipeline_mode<synchronous>, transform_indices = @transform_3, window_bounds = array<i64: 128, 128>}, {pipeline_mode = #tpu.pipeline_mode<synchronous>, transform_indices = @transform_4, window_bounds = array<i64: 8, 128>}, {transform_indices = @transform_5, window_bounds = array<i64: 8, 6>}]} {
    %c0 = arith.constant 0 : index
    %c0_0 = arith.constant 0 : index
    %0 = vector.load %arg1[%c0, %c0_0] : memref<8x16xf32, #tpu.memory_space<vmem>>, vector<8x16xf32>
    %c0_1 = arith.constant 0 : index
    %c0_2 = arith.constant 0 : index
    %1 = vector.load %arg5[%c0_1, %c0_2] : memref<8x128xf32, #tpu.memory_space<vmem>>, vector<8x128xf32>
    %2 = vector.extract_strided_slice %1 {offsets = [0, 0], sizes = [1, 128], strides = [1, 1]} : vector<8x128xf32> to vector<1x128xf32>
    %3 = vector.extract_strided_slice %1 {offsets = [1, 0], sizes = [1, 128], strides = [1, 1]} : vector<8x128xf32> to vector<1x128xf32>
    %4 = vector.extract_strided_slice %1 {offsets = [2, 0], sizes = [1, 128], strides = [1, 1]} : vector<8x128xf32> to vector<1x128xf32>
    %5 = vector.extract_strided_slice %1 {offsets = [3, 0], sizes = [1, 128], strides = [1, 1]} : vector<8x128xf32> to vector<1x128xf32>
    %6 = vector.extract_strided_slice %1 {offsets = [4, 0], sizes = [1, 128], strides = [1, 1]} : vector<8x128xf32> to vector<1x128xf32>
    %7 = vector.extract_strided_slice %1 {offsets = [5, 0], sizes = [1, 128], strides = [1, 1]} : vector<8x128xf32> to vector<1x128xf32>
    %8 = vector.extract_strided_slice %1 {offsets = [6, 0], sizes = [1, 128], strides = [1, 1]} : vector<8x128xf32> to vector<1x128xf32>
    %9 = arith.truncf %0 : vector<8x16xf32> to vector<8x16xbf16>
    %c0_3 = arith.constant 0 : index
    %c0_4 = arith.constant 0 : index
    %10 = vector.load %arg2[%c0_3, %c0_4] : memref<16x128xbf16, #tpu.memory_space<vmem>>, vector<16x128xbf16>
    %cst = arith.constant dense<0.000000e+00> : vector<8x128xf32>
    %11 = tpu.matmul %9, %10, %cst {dimension_numbers = #tpu.dot_dimension_numbers<[1], [0], [0], [1], [0, 0, 1, 1], [], []>} : vector<8x16xbf16>, vector<16x128xbf16>, vector<8x128xf32> -> vector<8x128xf32>
    %12 = vector.broadcast %2 : vector<1x128xf32> to vector<8x128xf32>
    %13 = arith.addf %11, %12 : vector<8x128xf32>
    %cst_5 = arith.constant dense<0.000000e+00> : vector<8xf32>
    %14 = vector.multi_reduction <add>, %13, %cst_5 [1] : vector<8x128xf32> to vector<8xf32>
    %15 = vector.shape_cast %14 : vector<8xf32> to vector<8x1xf32>
    %16 = arith.mulf %13, %13 : vector<8x128xf32>
    %cst_6 = arith.constant dense<0.000000e+00> : vector<8xf32>
    %17 = vector.multi_reduction <add>, %16, %cst_6 [1] : vector<8x128xf32> to vector<8xf32>
    %18 = vector.shape_cast %17 : vector<8xf32> to vector<8x1xf32>
    %cst_7 = arith.constant 1.562500e-02 : f32
    %19 = vector.broadcast %cst_7 : f32 to vector<8x1xf32>
    %20 = arith.mulf %15, %19 : vector<8x1xf32>
    %cst_8 = arith.constant 1.562500e-02 : f32
    %21 = vector.broadcast %cst_8 : f32 to vector<8x1xf32>
    %22 = arith.mulf %18, %21 : vector<8x1xf32>
    %23 = arith.mulf %20, %20 : vector<8x1xf32>
    %24 = arith.subf %22, %23 : vector<8x1xf32>
    %25 = vector.broadcast %20 : vector<8x1xf32> to vector<8x128xf32>
    %26 = arith.subf %13, %25 : vector<8x128xf32>
    %cst_9 = arith.constant 9.99999974E-6 : f32
    %27 = vector.broadcast %cst_9 : f32 to vector<8x1xf32>
    %28 = arith.addf %24, %27 : vector<8x1xf32>
    %29 = math.rsqrt %28 : vector<8x1xf32>
    %30 = vector.broadcast %29 : vector<8x1xf32> to vector<8x128xf32>
    %31 = arith.mulf %26, %30 : vector<8x128xf32>
    %32 = vector.broadcast %3 : vector<1x128xf32> to vector<8x128xf32>
    %33 = arith.mulf %31, %32 : vector<8x128xf32>
    %34 = vector.broadcast %4 : vector<1x128xf32> to vector<8x128xf32>
    %35 = arith.addf %33, %34 : vector<8x128xf32>
    %cst_10 = arith.constant 0.000000e+00 : f32
    %36 = vector.broadcast %cst_10 : f32 to vector<8x128xf32>
    %37 = arith.maximumf %35, %36 : vector<8x128xf32>
    %38 = arith.truncf %37 : vector<8x128xf32> to vector<8x128xbf16>
    %c0_11 = arith.constant 0 : index
    %c0_12 = arith.constant 0 : index
    %39 = vector.load %arg3[%c0_11, %c0_12] : memref<128x128xbf16, #tpu.memory_space<vmem>>, vector<128x128xbf16>
    %cst_13 = arith.constant dense<0.000000e+00> : vector<8x128xf32>
    %40 = tpu.matmul %38, %39, %cst_13 {dimension_numbers = #tpu.dot_dimension_numbers<[1], [0], [0], [1], [0, 0, 1, 1], [], []>} : vector<8x128xbf16>, vector<128x128xbf16>, vector<8x128xf32> -> vector<8x128xf32>
    %41 = vector.broadcast %5 : vector<1x128xf32> to vector<8x128xf32>
    %42 = arith.addf %40, %41 : vector<8x128xf32>
    %cst_14 = arith.constant dense<0.000000e+00> : vector<8xf32>
    %43 = vector.multi_reduction <add>, %42, %cst_14 [1] : vector<8x128xf32> to vector<8xf32>
    %44 = vector.shape_cast %43 : vector<8xf32> to vector<8x1xf32>
    %45 = arith.mulf %42, %42 : vector<8x128xf32>
    %cst_15 = arith.constant dense<0.000000e+00> : vector<8xf32>
    %46 = vector.multi_reduction <add>, %45, %cst_15 [1] : vector<8x128xf32> to vector<8xf32>
    %47 = vector.shape_cast %46 : vector<8xf32> to vector<8x1xf32>
    %cst_16 = arith.constant 1.562500e-02 : f32
    %48 = vector.broadcast %cst_16 : f32 to vector<8x1xf32>
    %49 = arith.mulf %44, %48 : vector<8x1xf32>
    %cst_17 = arith.constant 1.562500e-02 : f32
    %50 = vector.broadcast %cst_17 : f32 to vector<8x1xf32>
    %51 = arith.mulf %47, %50 : vector<8x1xf32>
    %52 = arith.mulf %49, %49 : vector<8x1xf32>
    %53 = arith.subf %51, %52 : vector<8x1xf32>
    %54 = vector.broadcast %49 : vector<8x1xf32> to vector<8x128xf32>
    %55 = arith.subf %42, %54 : vector<8x128xf32>
    %cst_18 = arith.constant 9.99999974E-6 : f32
    %56 = vector.broadcast %cst_18 : f32 to vector<8x1xf32>
    %57 = arith.addf %53, %56 : vector<8x1xf32>
    %58 = math.rsqrt %57 : vector<8x1xf32>
    %59 = vector.broadcast %58 : vector<8x1xf32> to vector<8x128xf32>
    %60 = arith.mulf %55, %59 : vector<8x128xf32>
    %61 = vector.broadcast %6 : vector<1x128xf32> to vector<8x128xf32>
    %62 = arith.mulf %60, %61 : vector<8x128xf32>
    %63 = vector.broadcast %7 : vector<1x128xf32> to vector<8x128xf32>
    %64 = arith.addf %62, %63 : vector<8x128xf32>
    %cst_19 = arith.constant 0.000000e+00 : f32
    %65 = vector.broadcast %cst_19 : f32 to vector<8x128xf32>
    %66 = arith.maximumf %64, %65 : vector<8x128xf32>
    %67 = arith.truncf %66 : vector<8x128xf32> to vector<8x128xbf16>
    %c0_20 = arith.constant 0 : index
    %c0_21 = arith.constant 0 : index
    %68 = vector.load %arg4[%c0_20, %c0_21] : memref<128x128xbf16, #tpu.memory_space<vmem>>, vector<128x128xbf16>
    %cst_22 = arith.constant dense<0.000000e+00> : vector<8x128xf32>
    %69 = tpu.matmul %67, %68, %cst_22 {dimension_numbers = #tpu.dot_dimension_numbers<[1], [0], [0], [1], [0, 0, 1, 1], [], []>} : vector<8x128xbf16>, vector<128x128xbf16>, vector<8x128xf32> -> vector<8x128xf32>
    %70 = vector.broadcast %8 : vector<1x128xf32> to vector<8x128xf32>
    %71 = arith.addf %69, %70 : vector<8x128xf32>
    %cst_23 = arith.constant dense<0xFF800000> : vector<8xf32>
    %72 = vector.multi_reduction <maximumf>, %71, %cst_23 [1] : vector<8x128xf32> to vector<8xf32>
    %73 = vector.shape_cast %72 : vector<8xf32> to vector<8x1xf32>
    %74 = vector.broadcast %73 : vector<8x1xf32> to vector<8x128xf32>
    %75 = arith.subf %71, %74 : vector<8x128xf32>
    %76 = math.exp %75 : vector<8x128xf32>
    %cst_24 = arith.constant dense<0.000000e+00> : vector<8xf32>
    %77 = vector.multi_reduction <add>, %76, %cst_24 [1] : vector<8x128xf32> to vector<8xf32>
    %78 = vector.shape_cast %77 : vector<8xf32> to vector<8x1xf32>
    %79 = vector.broadcast %78 : vector<8x1xf32> to vector<8x128xf32>
    %80 = arith.divf %76, %79 : vector<8x128xf32>
    %81 = vector.extract_strided_slice %80 {offsets = [0, 0], sizes = [8, 6], strides = [1, 1]} : vector<8x128xf32> to vector<8x6xf32>
    %c0_25 = arith.constant 0 : index
    %c0_26 = arith.constant 0 : index
    %82 = vector.load %arg6[%c0_25, %c0_26] : memref<8x6xf32, #tpu.memory_space<vmem>>, vector<8x6xf32>
    tpu.vector_store %arg6[%c0_25, %c0_26], %81 {strides = array<i32>} : memref<8x6xf32, #tpu.memory_space<vmem>>, vector<8x6xf32>,
    return
  }
  func.func @transform_0(%arg0: i32) -> (i32, i32) {
    %c0_i32 = arith.constant 0 : i32
    %c0_i32_0 = arith.constant 0 : i32
    return %arg0, %c0_i32 : i32, i32
  }
  func.func @transform_1(%arg0: i32) -> (i32, i32) {
    %c0_i32 = arith.constant 0 : i32
    %c0_i32_0 = arith.constant 0 : i32
    %c0_i32_1 = arith.constant 0 : i32
    return %c0_i32, %c0_i32_0 : i32, i32
  }
  func.func @transform_2(%arg0: i32) -> (i32, i32) {
    %c0_i32 = arith.constant 0 : i32
    %c0_i32_0 = arith.constant 0 : i32
    %c0_i32_1 = arith.constant 0 : i32
    return %c0_i32, %c0_i32_0 : i32, i32
  }
  func.func @transform_3(%arg0: i32) -> (i32, i32) {
    %c0_i32 = arith.constant 0 : i32
    %c0_i32_0 = arith.constant 0 : i32
    %c0_i32_1 = arith.constant 0 : i32
    return %c0_i32, %c0_i32_0 : i32, i32
  }
  func.func @transform_4(%arg0: i32) -> (i32, i32) {
    %c0_i32 = arith.constant 0 : i32
    %c0_i32_0 = arith.constant 0 : i32
    %c0_i32_1 = arith.constant 0 : i32
    return %c0_i32, %c0_i32_0 : i32, i32
  }
  func.func @transform_5(%arg0: i32) -> (i32, i32) {
    %c0_i32 = arith.constant 0 : i32
    %c0_i32_0 = arith.constant 0 : i32
    return %arg0, %c0_i32 : i32, i32
  }
}

</mosaic_0001>

<bundles_post_ra>
// kernel: tpu_custom_call.1
= control target key start
LH: loop header
LB: loop body
LE: loop exit
PB: predicated region body
PF: predicated region fallthrough
CT: control target
= control target key end

     0   :  { %10 = vsyncpa [#allocation3], 0  ;;  %s1364_s0 = inlined_call_operand.hbm [shape: f32[16,16], index: 0, kind: input, shape index: {}]   ;;  %s1365_s1 = inlined_call_operand.hbm [shape: bf16[16,128], index: 1, kind: input, shape index: {}]   ;;  %s1366_s2 = inlined_call_operand.hbm [shape: bf16[128,128], index: 2, kind: input, shape index: {}]   ;;  %s1367_s3 = inlined_call_operand.hbm [shape: bf16[128,128], index: 3, kind: input, shape index: {}]   ;;  %s1368_s4 = inlined_call_operand.vmem [shape: f32[8,128], index: 4, kind: input, shape index: {}]   ;;  %s1369_s5 = inlined_call_operand.vmem [shape: f32[16,6], index: 5, kind: output, shape index: {}]  }
   0x1   :  { %12 = vsyncpa [#allocation3 + $0x1], 0 }
   0x2   :  { %13 = vsyncpa [#allocation5], 0 }
   0x3   :  { %14 = vsyncpa [#allocation8], 0  ;;  %s1110_s18 = smov 0   ;;  %s1112_s19 = smov 0  }
   0x4   :  { %s1114_s20 = smov 0   ;;  %s1116_s21 = smov 0  }
   0x5 LB: > { %s1129_s22 = sadd.s32 4294967295, %s1070_s21   ;;  %p40_p0 = scmp.ne.s32.totalorder %s1062_s19, %s1058_s18  ;;  %s1070_s21 = sphi %s1116_s21, %s1387_s21   ;;  %s1066_s20 = sphi %s1114_s20, %s1386_s20   ;;  %s1062_s19 = sphi %s1112_s19, %s1385_s19   ;;  %s1058_s18 = sphi %s1110_s18, %s1384_s18  }
   0x6   : > { %p1370_p1 = scmp.eq.s32.totalorder %s1129_s22, 0  ;;  %p716_p2 = scmp.ge.s32.totalorder %s1070_s21, 1 }
   0x7   : > { %p161_p3 = scmp.lt.s32.totalorder %s1070_s21, 3  ;;  %s1072_s25 = smov [#allocation4]  }
   0x8   : > { %p1137_p4 = por %p1370_p1, %p40_p0  ;;  %s173_s26 = sshll.u32 %s1072_s25, 4  ;;  %s1145_s26 = int_to_ptr.vmem [resolvable:$true] %s173_s26 }
   0x9   : > { %p1141_p5 = pnand %p716_p2, %p161_p3  ;;  %s1073_s28 = smov [#allocation6]  }
   0xa   : > { %s1373_s23 = scalar_select %p1137_p4, 1, 0 }
   0xb   : > { %s1374_s24 = scalar_select %p1141_p5, 1, 0 }
   0xc   : > { %p829_p6 = pneg %p1141_p5  ;;  %s186_s29 = sshll.u32 %s1073_s28, 4  ;;  %s1155_s29 = int_to_ptr.vmem [resolvable:$true] %s186_s29 }
   0xd   : > { %s1074_s30 = smov [#allocation7]   ;;  %s914_s9 = scalar_lea.hbm %s1365_s1, 128 }
   0xe   : > { %p1151_p7 = pnand %p829_p6, %p1370_p1  ;;  %s1157_s6 = sshll.u32 %s1074_s30, 4  ;;  %s200_s6 = int_to_ptr.vmem [resolvable:$true] %s1157_s6 }
   0xf   : > { %p915_p8 = scmp.ne.s32.totalorder %s1365_s1, %s914_s9  ;;  %p921_p12 = scmp.lt.u32.totalorder %s914_s9, %s1365_s1 }
  0x10   : > { %p1167_p9 = pneg %p1151_p7 }
  0x12   : > { %p917_p10 = pnand %p1167_p9, %p915_p8 }
  0x14   : > { %p918_p11 = pneg %p917_p10 }
  0x16   : > { %p923_p13 = pnand %p921_p12, %p918_p11 }
  0x18   : > { %926 = shalt.err (!%p923_p13)
}
  0x19   : > { %s927_s15 = scalar_lea.vmem %s1145_s26, 128  ;;  %p935_p6 = scmp.lt.s32.totalorder %s1145_s26, %s1145_s26 }
  0x1a   : > { %p928_p0 = scmp.ne.s32.totalorder %s1145_s26, %s927_s15  ;;  %p936_p1 = scmp.lt.s32.totalorder %s927_s15, %s927_s15 }
  0x1c   : > { %p930_p2 = pnand %p928_p0, %p1167_p9  ;;  %p937_p8 = por %p936_p1, %p935_p6 }
  0x1e   : > { %p931_p3 = pneg %p930_p2 }
  0x20   : > { %p938_p10 = pnand %p937_p8, %p931_p3 }
  0x22   : > { %941 = shalt.err (!%p938_p10)
}
  0x23   : > { %s1075_s16 = smov 64   ;;  %s1076_s17 = smov 4  }
  0x24   : > { %832 = dma.hbm_to_vmem [thread:$0]  (!%p1151_p7), %s1365_s1, 128, %s1145_s26, [#allocation5], %s1075_s16, %s1075_s16, %s1076_s17  }
  0x25   : > { %s942_s7 = scalar_lea.hbm %s1366_s2, 1024 }
  0x26   : > { %p943_p1 = scmp.ne.s32.totalorder %s1366_s2, %s942_s7  ;;  %p949_p13 = scmp.lt.u32.totalorder %s942_s7, %s1366_s2 }
  0x28   : > { %p945_p11 = pnand %p943_p1, %p1167_p9 }
  0x2a   : > { %p946_p12 = pneg %p945_p11 }
  0x2c   : > { %p951_p0 = pnand %p949_p13, %p946_p12 }
  0x2e   : > { %954 = shalt.err (!%p951_p0)
}
  0x2f   : > { %s955_s26 = scalar_lea.vmem %s1155_s29, 1024  ;;  %p963_p8 = scmp.lt.s32.totalorder %s1155_s29, %s1155_s29 }
  0x30   : > { %p956_p2 = scmp.ne.s32.totalorder %s1155_s29, %s955_s26  ;;  %p964_p10 = scmp.lt.s32.totalorder %s955_s26, %s955_s26 }
  0x32   : > { %p958_p3 = pnand %p956_p2, %p1167_p9  ;;  %p965_p1 = por %p964_p10, %p963_p8 }
  0x34   : > { %p959_p6 = pneg %p958_p3 }
  0x36   : > { %p966_p11 = pnand %p965_p1, %p959_p6 }
  0x38   : > { %969 = shalt.err (!%p966_p11)
}
  0x39   : > { %835 = dma.hbm_to_vmem [thread:$0]  (!%p1151_p7), %s1366_s2, 1024, %s1155_s29, [#allocation5], %s1075_s16, %s1075_s16, %s1076_s17  }
  0x3a   : > { %s970_s25 = scalar_lea.hbm %s1367_s3, 1024 }
  0x3b   : > { %p971_p12 = scmp.ne.s32.totalorder %s1367_s3, %s970_s25  ;;  %p977_p2 = scmp.lt.u32.totalorder %s970_s25, %s1367_s3 }
  0x3d   : > { %p973_p13 = pnand %p971_p12, %p1167_p9 }
  0x3f   : > { %p974_p0 = pneg %p973_p13 }
  0x41   : > { %p979_p3 = pnand %p977_p2, %p974_p0 }
  0x43   : > { %982 = shalt.err (!%p979_p3)
}
  0x44   : > { %s983_s9 = scalar_lea.vmem %s200_s6, 1024  ;;  %p991_p1 = scmp.lt.s32.totalorder %s200_s6, %s200_s6 }
  0x45   : > { %p984_p6 = scmp.ne.s32.totalorder %s200_s6, %s983_s9  ;;  %p992_p11 = scmp.lt.s32.totalorder %s983_s9, %s983_s9 }
  0x47   : > { %p986_p8 = pnand %p984_p6, %p1167_p9  ;;  %p993_p4 = por %p992_p11, %p991_p1 }
  0x49   : > { %p987_p10 = pneg %p986_p8 }
  0x4b   : > { %p994_p5 = pnand %p993_p4, %p987_p10 }
  0x4d   : > { %997 = shalt.err (!%p994_p5)
}
  0x4e   : > { %838 = dma.hbm_to_vmem [thread:$0]  (!%p1151_p7), %s1367_s3, 1024, %s200_s6, [#allocation8], %s1075_s16, %s1075_s16, %s1076_s17  }
  0x4f   : > { %s1240_s12 = sadd.s32 1, %s1070_s21   ;;  %s27_s11 = sadd.s32 1, %s1066_s20 }
  0x50   : > { %s24_s27 = ssub.s32 %s1070_s21, %s1240_s12  ;;  %p34_p5 = scmp.ne.s32.totalorder %s1066_s20, %s1062_s19 }
  0x51   : > { %p25_p4 = scmp.eq.s32.totalorder %s24_s27, 0  ;;  %p35_p9 = scmp.eq.s32.totalorder %s1070_s21, 0 }
  0x52   : > { %p846_p12 = scmp.lt.s32.totalorder %s1070_s21, 2  ;;  %s216_s13 = sand.u32 1, %s1066_s20  }
  0x53   : > { %s1250_s26 = scalar_select %p25_p4, %s1066_s20, %s27_s11  }
  0x54   : > { %p36_p13 = por %p35_p9, %p34_p5  ;;  %s721_s14 = sshll.u32 %s216_s13, 3 }
  0x55   : > { %s722_s15 = sshll.u32 %s1070_s21, 7  ;;  %s220_s6 = scalar_lea.vmem [#allocation2], %s721_s14 }
  0x56   : > { %s1257_s28 = scalar_lea.hbm %s1364_s0, %s722_s15  ;;  %s227_s16 = sshll.u32 %s220_s6, 4  ;;  %s1259_s16 = int_to_ptr.vmem [resolvable:$true] %s227_s16 }
  0x57   : > { %p1261_p7 = pnand %p846_p12, %p36_p13  ;;  %s217_s21 = scalar_lea.sflag [#allocation3], %s216_s13 }
  0x58   : > { %s998_s30 = scalar_lea.hbm %s1257_s28, 128  ;;  %s1003_s9 = scalar_lea.hbm %s1364_s0, 256 }
  0x59   : > { %p999_p0 = scmp.ne.s32.totalorder %s1257_s28, %s998_s30  ;;  %p1000_p2 = pneg %p1261_p7 }
  0x5a   : > { %p1004_p8 = scmp.lt.u32.totalorder %s1257_s28, %s1364_s0  ;;  %p1005_p10 = scmp.lt.u32.totalorder %s1003_s9, %s998_s30 }
  0x5b   : > { %p1001_p3 = pnand %p1000_p2, %p999_p0  ;;  %p1007_p11 = scmp.lt.u32.totalorder %s998_s30, %s1257_s28 }
  0x5c   : > { %p1006_p1 = por %p1005_p10, %p1004_p8 }
  0x5d   : > { %p1002_p6 = pneg %p1001_p3 }
  0x5e   : > { %p1008_p4 = por %p1007_p11, %p1006_p1 }
  0x60   : > { %p1009_p5 = pnand %p1008_p4, %p1002_p6 }
  0x62   : > { %1012 = shalt.err (!%p1009_p5)
}
  0x63   : > { %s1013_s27 = scalar_lea.vmem %s1259_s16, 128  ;;  %s1077_s11 = smov [#allocation2]  }
  0x64   : > { %p1014_p9 = scmp.ne.s32.totalorder %s1259_s16, %s1013_s27  ;;  %s1018_s13 = sshll.u32 %s1077_s11, 4  ;;  %s1019_s13 = int_to_ptr.vmem [resolvable:$false] %s1018_s13 }
  0x65   : > { %s1020_s14 = scalar_lea.vmem %s1019_s13, 256  ;;  %p1021_p0 = scmp.lt.s32.totalorder %s1259_s16, %s1019_s13 }
  0x66   : > { %p1016_p12 = pnand %p1014_p9, %p1000_p2  ;;  %p1022_p3 = scmp.lt.s32.totalorder %s1020_s14, %s1013_s27 }
  0x68   : > { %p1017_p13 = pneg %p1016_p12  ;;  %p1023_p8 = por %p1022_p3, %p1021_p0 }
  0x6a   : > { %p1024_p10 = pnand %p1023_p8, %p1017_p13 }
  0x6c   : > { %1027 = shalt.err (!%p1024_p10)
}
  0x6d   : > { %842 = dma.hbm_to_vmem [thread:$0]  (!%p1261_p7), %s1257_s28, 128, %s1259_s16, %s217_s21  }
  0x6e   : > { %p1378_p6 = scmp.ne.s32.totalorder %s1374_s24, 0 }
  0x6f   : > { %s238_s15 = sand.u32 (!%p1378_p6), 1, %s1062_s19   ;;  %p1379_p2 = scmp.ne.s32.totalorder (!%p1378_p6), %s1373_s23, 0 }
  0x70   : > { %236 = sbr.rel (%p1378_p6) target bundleno = 1433 (0x599), region = 40  ;;  %s724_s18 = sshll.u32 (!%p1378_p6), %s238_s15, 3 }
  0x71   : > { %s239_s25 = scalar_lea.sflag (!%p1378_p6), [#allocation3], %s238_s15  ;;  %s242_s6 = scalar_lea.vmem (!%p1378_p6), [#allocation2], %s724_s18 }
  0x77   : > { %1045 = dma.done.wait (%p1379_p2), %s239_s25, 128  }
  0x78   : > { %1047 = vsyncadd (%p1379_p2), %s239_s25, 4294967168  ;;  %p1380_p1 = scmp.eq.s32.totalorder %s1129_s22, 0 }
  0x7a   : > { %1049 = dma.done.wait (%p1380_p1), [#allocation5], 1152   ;;  %p1381_p11 = pmov %p1380_p1 }
  0x7b   : > { %p1382_p7 = pmov %p1380_p1 }
  0x7c   : > { %1051 = vsyncadd (%p1381_p11), [#allocation5], 4294966144 }
  0x7d   : > { %1053 = dma.done.wait (%p1382_p7), [#allocation8], 1024   ;;  %p1383_p4 = pmov %p1380_p1 }
  0x7e   : > { %v1078_v0 = vmov 0.0   ;;  %vm1079_vm0 = vmmov 0   ;;  %v889_v1 = vld [vmem:[#allocation4] sm:$0xff]   ;;  %v285_v2 = vld [vmem:[%s242_s6] sm:$0xff]  ;;  %vm300_vm1 = vcmask 130048   ;;  %v290_v4 = vlaneseq  ;;  %v890_v15 = vld [vmem:[#allocation6] sm:$0xff]  }
  0x7f   : > { %1055 = vsyncadd (%p1383_p4), [#allocation8], 4294966272  ;;  %769 = vmatprep.subr.bf16.mxu0 %v1078_v0  ;;  %771 = vmatprep.mubr.msk.bf16.mxu0 %vm1079_vm0, %v1078_v0  ;;  %v287_v3 = vpack.c.bf16 %v285_v2, %v285_v2  ;;  %v1317_v7 = vld [vmem:[%s1368_s4] sm:$0xff]  ;;  %v892_v17 = vld [vmem:[#allocation6 + $0x10] sm:$0xff]   ;;  %p280_p5 = scmp.lt.s32.totalorder %s1129_s22, 1  ;;  %vm619_vm2 = vcmask 48128  }
  0x80   : > { %775 = vmatprep.subr.bf16.mxu1 %v1078_v0  ;;  %791 = vmatprep.mubr.msk.bf16.mxu1 %vm1079_vm0, %v1078_v0  ;;  %v1311_v5 = vshrl.u32 %v290_v4, 7  ;;  %v891_v16 = vld [vmem:[#allocation6 + $0x8] sm:$0xff]   ;;  %v893_v18 = vld [vmem:[#allocation6 + $0x18] sm:$0xff]   ;;  %v894_v19 = vld [vmem:[#allocation6 + $0x20] sm:$0xff]  }
  0x81   : > { %770 = vmatpush3.bf16.msra.mxu0 %v889_v1  ;;  %776 = vmatpush3.bf16.msra.mxu1 %v890_v15  ;;  %v895_v20 = vld [vmem:[#allocation6 + $0x28] sm:$0xff]   ;;  %v896_v21 = vld [vmem:[#allocation6 + $0x30] sm:$0xff]   ;;  %v897_v22 = vld [vmem:[#allocation6 + $0x38] sm:$0xff]   ;;  %s1389_s22 = smov (!%p280_p5, %s1129_s22), 1 }
  0x82   : > { %795 = vmatprep.subr.bf16.mxu0 %v1078_v0  ;;  %v292_v6 = vsub.s32 0, %v1311_v5  ;;  %777 = vmatprep.subr.bf16.mxu1 %v1078_v0  ;;  %v359_v30 = vsub.s32 1, %v1311_v5  ;;  %v364_v31 = vsub.s32 2, %v1311_v5  ;;  %v387_v41 = vsub.s32 3, %v1311_v5  ;;  %v898_v49 = vld [vmem:[#allocation7] sm:$0xff]   ;;  %v899_v50 = vld [vmem:[#allocation7 + $0x8] sm:$0xff]  }
  0x83   : > { %v900_v51 = vld [vmem:[#allocation7 + $0x10] sm:$0xff]   ;;  %v901_v52 = vld [vmem:[#allocation7 + $0x18] sm:$0xff]   ;;  %v902_v53 = vld [vmem:[#allocation7 + $0x20] sm:$0xff]   ;;  %v492_v1 = vsub.s32 4, %v1311_v5  ;;  %v497_v2 = vsub.s32 5, %v1311_v5  ;;  %s728_s28 = sshll.u32 %s1389_s22, 3 }
  0x84   : > { %772 = vmatmul.mubr.msk.bf16.vlgmr.msra.gmra.mrb[0].mxu0 %vm300_vm1, %v287_v3  ;;  %v293_v8 = vrot.slane %v1317_v7, %v292_v6  ;;  %v360_v33 = vrot.slane %v1317_v7, %v359_v30  ;;  %v365_v36 = vrot.slane %v1317_v7, %v364_v31  ;;  %v388_v42 = vrot.slane %v1317_v7, %v387_v41  ;;  %v903_v54 = vld [vmem:[#allocation7 + $0x28] sm:$0xff]   ;;  %v904_v55 = vld [vmem:[#allocation7 + $0x30] sm:$0xff]   ;;  %v905_v56 = vld [vmem:[#allocation7 + $0x38] sm:$0xff]   ;;  %s283_s21 = scalar_lea.vmem %s1369_s5, %s728_s28 }
  0x85   : > { %811 = vmatprep.mubr.msk.bf16.mxu0 %vm1079_vm0, %v1078_v0  ;;  %778 = vmatpush3.bf16.msra.mxu1 %v891_v16  ;;  %v493_v4 = vrot.slane %v1317_v7, %v492_v1 }
  0x86   : > { %779 = vmatprep.subr.bf16.mxu1 %v1078_v0  ;;  %796 = vmatpush3.bf16.msra.mxu0 %v898_v49 }
  0x87   : > { %797 = vmatprep.subr.bf16.mxu0 %v1078_v0 }
  0x89   : > { %780 = vmatpush3.bf16.msra.mxu1 %v892_v17 }
  0x8a   : > { %781 = vmatprep.subr.bf16.mxu1 %v1078_v0  ;;  %798 = vmatpush3.bf16.msra.mxu0 %v899_v50 }
  0x8b   : > { %799 = vmatprep.subr.bf16.mxu0 %v1078_v0 }
  0x8d   : > { %782 = vmatpush3.bf16.msra.mxu1 %v893_v18 }
  0x8e   : > { %783 = vmatprep.subr.bf16.mxu1 %v1078_v0  ;;  %800 = vmatpush3.bf16.msra.mxu0 %v900_v51 }
  0x8f   : > { %801 = vmatprep.subr.bf16.mxu0 %v1078_v0 }
  0x91   : > { %784 = vmatpush3.bf16.msra.mxu1 %v894_v19 }
  0x92   : > { %785 = vmatprep.subr.bf16.mxu1 %v1078_v0  ;;  %802 = vmatpush3.bf16.msra.mxu0 %v901_v52 }
  0x93   : > { %803 = vmatprep.subr.bf16.mxu0 %v1078_v0 }
  0x95   : > { %786 = vmatpush3.bf16.msra.mxu1 %v895_v20 }
  0x96   : > { %787 = vmatprep.subr.bf16.mxu1 %v1078_v0  ;;  %804 = vmatpush3.bf16.msra.mxu0 %v902_v53 }
  0x97   : > { %805 = vmatprep.subr.bf16.mxu0 %v1078_v0 }
  0x99   : > { %788 = vmatpush3.bf16.msra.mxu1 %v896_v21 }
  0x9a   : > { %789 = vmatprep.subr.bf16.mxu1 %v1078_v0  ;;  %806 = vmatpush3.bf16.msra.mxu0 %v903_v54 }
  0x9b   : > { %807 = vmatprep.subr.bf16.mxu0 %v1078_v0 }
  0x9d   : > { %790 = vmatpush3.bf16.msra.mxu1 %v897_v22 }
  0x9e   : > { %808 = vmatpush3.bf16.msra.mxu0 %v904_v55 }
  0x9f   : > { %809 = vmatprep.subr.bf16.mxu0 %v1078_v0  ;;  %v498_v0 = vrot.slane %v1317_v7, %v497_v2 }
  0xa2   : > { %810 = vmatpush3.bf16.msra.mxu0 %v905_v56 }
 0x157   : > { %v338_v9 = vpop.f32.mrb[0].mxu0 }
 0x158   : > { %v339_v10 = vadd.f32 %v338_v9, %v293_v8  ;;  %v773_v11 = vpop.f32.mrb[1].mxu0 }
 0x159   : > { %v341_v12 = vpop.f32.mrb[2].mxu0 }
 0x15a   : > { %344 = vadd.xlane.f32.xlu0 %v339_v10  ;;  %v774_v13 = vpop.f32.mrb[3].mxu0  ;;  %v346_v14 = vmul.f32 %v339_v10, %v339_v10 }
 0x15b   : > { %v520_v13 = vsub.s32 6, %v1311_v5 }
 0x15e   : > { %347 = vadd.xlane.f32.xlu0 %v346_v14  ;;  %v521_v14 = vrot.slane %v1317_v7, %v520_v13 }
 0x1e7   : > { %v345_v23 = vpop.xlane.xlu0 %344 }
 0x1e8   : > { %v349_v24 = vmul.f32 0.015625, %v345_v23 }
 0x1ea   : > { %v351_v26 = vmul.f32 %v349_v24, %v349_v24  ;;  %v353_v32 = vsub.f32 %v339_v10, %v349_v24 }
 0x1eb   : > { %v348_v25 = vpop.xlane.xlu0 %347 }
 0x1ec   : > { %v350_v27 = vmul.f32 0.015625, %v348_v25 }
 0x1ee   : > { %v352_v28 = vsub.f32 %v350_v27, %v351_v26 }
 0x1f0   : > { %v354_v29 = vadd.f32 1e-05, %v352_v28 }
 0x1f2   : > { %906 = vrsqrt.f32 %v354_v29 }
 0x1fc   : > { %v907_v34 = vpop.eup %906 }
 0x1fd   : > { %v356_v35 = vmul.f32 %v907_v34, %v353_v32 }
 0x1ff   : > { %v361_v37 = vmul.f32 %v360_v33, %v356_v35 }
 0x201   : > { %v366_v38 = vadd.f32 %v365_v36, %v361_v37 }
 0x203   : > { %v367_v39 = vmax.f32 %v366_v38, 0.0 }
 0x205   : > { %v368_v40 = vpack.c.bf16 %v367_v39, %v367_v39 }
 0x207   : > { %792 = vmatmul.mubr.bf16.vlgmr.msra.gmra.mrb[0].mxu1 %v368_v40 }
 0x2da   : > { %v471_v43 = vpop.f32.mrb[0].mxu1 }
 0x2db   : > { %v472_v44 = vadd.f32 %v471_v43, %v388_v42  ;;  %v793_v45 = vpop.f32.mrb[1].mxu1 }
 0x2dc   : > { %v474_v46 = vpop.f32.mrb[2].mxu1 }
 0x2dd   : > { %477 = vadd.xlane.f32.xlu1 %v472_v44  ;;  %v794_v47 = vpop.f32.mrb[3].mxu1  ;;  %v479_v48 = vmul.f32 %v472_v44, %v472_v44 }
 0x2e1   : > { %480 = vadd.xlane.f32.xlu1 %v479_v48 }
 0x36a   : > { %v478_v57 = vpop.xlane.xlu1 %477 }
 0x36b   : > { %v482_v58 = vmul.f32 0.015625, %v478_v57 }
 0x36d   : > { %v484_v60 = vmul.f32 %v482_v58, %v482_v58  ;;  %v486_v3 = vsub.f32 %v472_v44, %v482_v58 }
 0x36e   : > { %v481_v59 = vpop.xlane.xlu1 %480 }
 0x36f   : > { %v483_v61 = vmul.f32 0.015625, %v481_v59 }
 0x371   : > { %v485_v62 = vsub.f32 %v483_v61, %v484_v60 }
 0x373   : > { %v487_v63 = vadd.f32 1e-05, %v485_v62 }
 0x375   : > { %908 = vrsqrt.f32 %v487_v63 }
 0x37f   : > { %v909_v6 = vpop.eup %908 }
 0x380   : > { %v489_v8 = vmul.f32 %v909_v6, %v486_v3 }
 0x382   : > { %v494_v9 = vmul.f32 %v493_v4, %v489_v8 }
 0x384   : > { %v499_v10 = vadd.f32 %v498_v0, %v494_v9 }
 0x386   : > { %v500_v11 = vmax.f32 %v499_v10, 0.0 }
 0x388   : > { %v501_v12 = vpack.c.bf16 %v500_v11, %v500_v11 }
 0x38a   : > { %812 = vmatmul.mubr.bf16.vlgmr.msra.gmra.mrb[4].mxu0 %v501_v12 }
 0x45d   : > { %v604_v15 = vpop.f32.mrb[4].mxu0 }
 0x45e   : > { %v605_v16 = vadd.f32 %v604_v15, %v521_v14  ;;  %v813_v17 = vpop.f32.mrb[5].mxu0 }
 0x45f   : > { %v607_v18 = vpop.f32.mrb[6].mxu0 }
 0x460   : > { %610 = vmax.xlane.f32.xlu0 %v605_v16  ;;  %v814_v19 = vpop.f32.mrb[7].mxu0 }
 0x4ed   : > { %v611_v20 = vpop.xlane.xlu0 %610 }
 0x4ee   : > { %v612_v21 = vsub.f32 %v605_v16, %v611_v20 }
 0x4f0   : > { %v613_v22 = vmul.f32 1.442695, %v612_v21 }
 0x4f2   : > { %910 = vpow2.f32 %v613_v22 }
 0x4fc   : > { %v911_v23 = vpop.eup %910 }
 0x4fd   : > { %615 = vadd.xlane.f32.xlu1 %v911_v23 }
 0x58a   : > { %v616_v24 = vpop.xlane.xlu1 %615 }
 0x58b   : > { %912 = vrcp.f32 %v616_v24 }
 0x595   : > { %v913_v5 = vpop.eup %912 }
 0x596   : > { %v618_v7 = vmul.f32 %v913_v5, %v911_v23 }
 0x598   : > { %620 = vst.msk [vmem:[%s283_s21] sm:$0xff] %vm619_vm2, %v618_v7 }
 0x599 PF: > { %p17_p9 = scmp.ge.s32.totalorder %s1240_s12, 4   ;;  %s1384_s18 = smov %s1062_s19 }
 0x59a   : > { %s1385_s19 = smov %s1066_s20  ;;  %s1386_s20 = smov %s1250_s26 }
 0x59b   : > { %s1387_s21 = smov %s1240_s12  ;;  %19 = sbr.rel (!%p17_p9) target bundleno = 5 (0x5), region = 92 }
 0x5a2   :  { %640 = vsyncpa [#allocation3], 1 }
 0x5a3   :  { %642 = vsyncpa [#allocation3 + $0x1], 1 }
 0x5a4   :  { %643 = vsyncpa [#allocation5], 1 }
 0x5a5   :  { %644 = vsyncpa [#allocation8], 1 }

</bundles_post_ra>
